<compile_context>
chip_gen: v7x
topology: tpu7x:2x2x1
jax: 0.10.0
libtpu: 0.0.40
codegen_flags: <defaults>
</compile_context>

<pallas_src>
import jax
import jax.numpy as jnp
from jax import lax
from jax.experimental import pallas as pl
from jax.experimental.pallas import tpu as pltpu

# --- TRA configuration (matches TRA.__init__ arguments) ----------------------
INPUT_SIZE = 16    # D : RNN/Transformer hidden size feeding TRA
NUM_STATES = 4     # S : number of latent states (>1 -> router path)
HIDDEN_SIZE = 8    # H : router LSTM hidden size
TAU = 1.0          # gumbel softmax temperature
SEQ_LEN = 8        # T : hist_loss sequence length
BATCH = 8          # N

OUT_LANES = 128    # lane-dense output slab width


def tra_kernel(hidden_ref, hist2d_ref,
               wih_ref, whh_ref, b_lstm_ref,
               wfc_h_ref, w_hid_ref, b_hid_ref,
               gumbel_ref, out_ref):
    hidden = hidden_ref[...]                               # [N, D] f32
    N = hidden.shape[0]
    H = whh_ref.shape[0]
    S = wfc_h_ref.shape[1]
    T = hist2d_ref.shape[0] // N

    # ---- fused hidden-side matmul (overlaps with the LSTM recurrence) -------
    # [N, D] @ [D, 2S] ; columns [0:S] = predictors, [S:2S] = fc hidden-part
    # (fc bias already folded into b_hid, so no extra add later).
    comb = (jnp.dot(hidden, w_hid_ref[...],
                    preferred_element_type=jnp.float32) + b_hid_ref[...])
    preds = comb[:, 0:S]                                   # predictors(hidden)
    fc_hidden = comb[:, S:2 * S]                           # hidden part of fc + b_fc

    # ---- hoisted LSTM input projection: one [T*N, S] @ [S, 4H] matmul -------
    gates_x = (jnp.dot(hist2d_ref[...], wih_ref[...],
                       preferred_element_type=jnp.float32)
               + b_lstm_ref[...])                          # [T*N, 4H], bias added once

    whh = whh_ref[...]                                     # [H, 4H]

    # ---- router LSTM recurrence (only h @ whh per step on the MXU) ----------
    h = jnp.zeros((N, H), jnp.float32)
    c = jnp.zeros((N, H), jnp.float32)
    for t in range(T):                                     # static, fully unrolled
        gx_t = gates_x[t * N:(t + 1) * N, :]               # sublane-aligned static slice
        gates = gx_t + jnp.dot(h, whh,
                               preferred_element_type=jnp.float32)  # [N, 4H] i,f,g,o
        sig = jax.nn.sigmoid(gates)                        # one EUP pass (g cols unused)
        g_g = jnp.tanh(gates[:, 2 * H:3 * H])
        i_g = sig[:, 0:H]
        f_g = sig[:, H:2 * H]
        o_g = sig[:, 3 * H:4 * H]
        c = f_g * c + i_g * g_g
        h = o_g * jnp.tanh(c)
    h_T = h                                                # router_out[:, -1]

    # fc(cat([temporal_pred_error, latent_representation], -1)) as split matmuls
    out = jnp.dot(h_T, wfc_h_ref[...],
                  preferred_element_type=jnp.float32) + fc_hidden    # [N, S]

    # gumbel softmax (hard=False); gumbel noise precomputed host-side
    logits = (out + gumbel_ref[...]) * (1.0 / TAU)
    z = logits - jnp.max(logits, axis=-1, keepdims=True)
    e = jnp.exp(z)
    denom = jnp.sum(e, axis=-1, keepdims=True)
    prob = e * pl.reciprocal(denom, approx=True)           # EUP vrcp, VALU divide gone

    # training-mode routing: final_pred = (preds * prob).sum(-1)
    # TODO(synk): eval-mode branch preds[range(N), prob.argmax(-1)] (gather) is
    # left to the wrapper / plain JAX if eval semantics are needed.
    final_pred = jnp.sum(preds * prob, axis=-1, keepdims=True)       # [N, 1]

    # single lane-dense output slab: [preds | prob | final_pred | zero pad]
    pad = jnp.zeros((N, OUT_LANES - 2 * S - 1), jnp.float32)
    out_ref[...] = jnp.concatenate([preds, prob, final_pred, pad], axis=-1)


def init_params(key):
    """Deterministic synthetic parameters with PyTorch-module shapes."""
    D, S, H = INPUT_SIZE, NUM_STATES, HIDDEN_SIZE
    ks = jax.random.split(key, 8)
    scale = 0.1
    return {
        # router: nn.LSTM(input_size=S, hidden_size=H, num_layers=1)
        "w_ih": scale * jax.random.normal(ks[0], (4 * H, S), jnp.float32),
        "w_hh": scale * jax.random.normal(ks[1], (4 * H, H), jnp.float32),
        "b_ih": scale * jax.random.normal(ks[2], (4 * H,), jnp.float32),
        "b_hh": scale * jax.random.normal(ks[3], (4 * H,), jnp.float32),
        # fc: nn.Linear(H + D, S)
        "w_fc": scale * jax.random.normal(ks[4], (S, H + D), jnp.float32),
        "b_fc": scale * jax.random.normal(ks[5], (S,), jnp.float32),
        # predictors: nn.Linear(D, S)
        "w_pred": scale * jax.random.normal(ks[6], (S, D), jnp.float32),
        "b_pred": scale * jax.random.normal(ks[7], (S,), jnp.float32),
    }


def prepare_params(params):
    """One-time weight prep (transposes / fusions) so the per-call wrapper is thin."""
    H = HIDDEN_SIZE
    wfc_d = params["w_fc"][:, H:].T                        # [D, S]  (hidden part of fc)
    return {
        "wih_T": params["w_ih"].T,                         # [S, 4H]
        "whh_T": params["w_hh"].T,                         # [H, 4H]
        "b_lstm": (params["b_ih"] + params["b_hh"])[None, :],          # [1, 4H]
        "wfc_h": params["w_fc"][:, :H].T,                  # [H, S]
        # fused hidden-side weight: [D, 2S] = [predictors | fc_hidden]
        "w_hid": jnp.concatenate([params["w_pred"].T, wfc_d], axis=1),
        "b_hid": jnp.concatenate([params["b_pred"], params["b_fc"]])[None, :],  # [1, 2S]
    }


def tra_forward(hidden, hist_loss, prep, gumbel_noise):
    """Pallas-backed TRA forward. Returns (final_pred [N], preds [N,S], prob [N,S])."""
    N, _ = hidden.shape
    S = NUM_STATES
    T = hist_loss.shape[1]

    # time-major flatten: [N, T, S] -> [T, N, S] -> [T*N, S]
    hist2d = jnp.transpose(hist_loss, (1, 0, 2)).reshape(T * N, S)

    vmem = pl.BlockSpec(memory_space=pltpu.MemorySpace.VMEM)
    slab = pl.pallas_call(
        tra_kernel,
        out_shape=jax.ShapeDtypeStruct((N, OUT_LANES), jnp.float32),
        in_specs=[vmem] * 9,
        out_specs=vmem,
    )(hidden, hist2d,
      prep["wih_T"], prep["whh_T"], prep["b_lstm"],
      prep["wfc_h"], prep["w_hid"], prep["b_hid"], gumbel_noise)

    preds = slab[:, :S]
    prob = slab[:, S:2 * S]
    final_pred = slab[:, 2 * S]
    return final_pred, preds, prob


def tra_reference(hidden, hist_loss, params, gumbel_noise):
    """Plain-JAX reference mirroring the PyTorch forward (training mode)."""
    H = HIDDEN_SIZE
    preds = hidden @ params["w_pred"].T + params["b_pred"]
    N = hidden.shape[0]
    h = jnp.zeros((N, H), jnp.float32)
    c = jnp.zeros((N, H), jnp.float32)
    b = params["b_ih"] + params["b_hh"]
    for t in range(hist_loss.shape[1]):
        x_t = hist_loss[:, t, :]
        gates = x_t @ params["w_ih"].T + h @ params["w_hh"].T + b
        i = jax.nn.sigmoid(gates[:, :H])
        f = jax.nn.sigmoid(gates[:, H:2 * H])
        g = jnp.tanh(gates[:, 2 * H:3 * H])
        o = jax.nn.sigmoid(gates[:, 3 * H:])
        c = f * c + i * g
        h = o * jnp.tanh(c)
    out = jnp.concatenate([h, hidden], axis=-1) @ params["w_fc"].T + params["b_fc"]
    prob = jax.nn.softmax((out + gumbel_noise) / TAU, axis=-1)
    final_pred = jnp.sum(preds * prob, axis=-1)
    return final_pred, preds, prob


if __name__ == "__main__":
    key = jax.random.PRNGKey(0)
    k_param, k_hidden, k_hist, k_gumbel = jax.random.split(key, 4)

    params = init_params(k_param)
    prep = prepare_params(params)          # one-time weight prep (not per forward)

    hidden = jax.random.normal(k_hidden, (BATCH, INPUT_SIZE), jnp.float32)
    hist_loss = jax.random.normal(k_hist, (BATCH, SEQ_LEN, NUM_STATES), jnp.float32)

    # gumbel noise: -log(-log(U)), drawn once deterministically (glue, not kernel)
    u = jax.random.uniform(k_gumbel, (BATCH, NUM_STATES), jnp.float32,
                           minval=1e-6, maxval=1.0 - 1e-6)
    gumbel_noise = -jnp.log(-jnp.log(u))

    final_pred, preds, prob = tra_forward(hidden, hist_loss, prep, gumbel_noise)
    jax.block_until_ready((final_pred, preds, prob))

    ref_fp, ref_preds, ref_prob = tra_reference(hidden, hist_loss, params, gumbel_noise)
    assert jnp.allclose(final_pred, ref_fp, rtol=1e-3, atol=1e-3)
    assert jnp.allclose(preds, ref_preds, rtol=1e-3, atol=1e-3)
    assert jnp.allclose(prob, ref_prob, rtol=1e-3, atol=1e-3)

    print("KERNEL_OK")
</pallas_src>

<mosaic_0001>
module attributes {stable_mosaic.version = 11 : i64} {
  func.func @tra_kernel(%arg0: memref<8x16xf32, #tpu.memory_space<vmem>>, %arg1: memref<64x4xf32, #tpu.memory_space<vmem>>, %arg2: memref<4x32xf32, #tpu.memory_space<vmem>>, %arg3: memref<8x32xf32, #tpu.memory_space<vmem>>, %arg4: memref<1x32xf32, #tpu.memory_space<vmem>>, %arg5: memref<8x4xf32, #tpu.memory_space<vmem>>, %arg6: memref<16x8xf32, #tpu.memory_space<vmem>>, %arg7: memref<1x8xf32, #tpu.memory_space<vmem>>, %arg8: memref<8x4xf32, #tpu.memory_space<vmem>>, %arg9: memref<8x128xf32, #tpu.memory_space<vmem>>) attributes {dimension_semantics = [], scalar_prefetch = 0 : i64, scratch_operands = 0 : i64, tpu.core_type = #tpu.core_type<tc>} {
    %c0 = arith.constant 0 : index
    %c0_0 = arith.constant 0 : index
    %0 = vector.load %arg0[%c0, %c0_0] : memref<8x16xf32, #tpu.memory_space<vmem>>, vector<8x16xf32>
    %c0_1 = arith.constant 0 : index
    %c0_2 = arith.constant 0 : index
    %1 = vector.load %arg6[%c0_1, %c0_2] : memref<16x8xf32, #tpu.memory_space<vmem>>, vector<16x8xf32>
    %cst = arith.constant dense<0.000000e+00> : vector<8x8xf32>
    %2 = tpu.matmul %0, %1, %cst {dimension_numbers = #tpu.dot_dimension_numbers<[1], [0], [0], [1], [0, 0, 1, 1], [], []>} : vector<8x16xf32>, vector<16x8xf32>, vector<8x8xf32> -> vector<8x8xf32>
    %c0_3 = arith.constant 0 : index
    %c0_4 = arith.constant 0 : index
    %3 = vector.load %arg7[%c0_3, %c0_4] : memref<1x8xf32, #tpu.memory_space<vmem>>, vector<1x8xf32>
    %4 = vector.broadcast %3 : vector<1x8xf32> to vector<8x8xf32>
    %5 = arith.addf %2, %4 : vector<8x8xf32>
    %6 = vector.extract_strided_slice %5 {offsets = [0, 0], sizes = [8, 4], strides = [1, 1]} : vector<8x8xf32> to vector<8x4xf32>
    %7 = vector.extract_strided_slice %5 {offsets = [0, 4], sizes = [8, 4], strides = [1, 1]} : vector<8x8xf32> to vector<8x4xf32>
    %c0_5 = arith.constant 0 : index
    %c0_6 = arith.constant 0 : index
    %8 = vector.load %arg1[%c0_5, %c0_6] : memref<64x4xf32, #tpu.memory_space<vmem>>, vector<64x4xf32>
    %c0_7 = arith.constant 0 : index
    %c0_8 = arith.constant 0 : index
    %9 = vector.load %arg2[%c0_7, %c0_8] : memref<4x32xf32, #tpu.memory_space<vmem>>, vector<4x32xf32>
    %cst_9 = arith.constant dense<0.000000e+00> : vector<64x32xf32>
    %10 = tpu.matmul %8, %9, %cst_9 {dimension_numbers = #tpu.dot_dimension_numbers<[1], [0], [0], [1], [0, 0, 1, 1], [], []>} : vector<64x4xf32>, vector<4x32xf32>, vector<64x32xf32> -> vector<64x32xf32>
    %c0_10 = arith.constant 0 : index
    %c0_11 = arith.constant 0 : index
    %11 = vector.load %arg4[%c0_10, %c0_11] : memref<1x32xf32, #tpu.memory_space<vmem>>, vector<1x32xf32>
    %12 = vector.broadcast %11 : vector<1x32xf32> to vector<64x32xf32>
    %13 = arith.addf %10, %12 : vector<64x32xf32>
    %c0_12 = arith.constant 0 : index
    %c0_13 = arith.constant 0 : index
    %14 = vector.load %arg3[%c0_12, %c0_13] : memref<8x32xf32, #tpu.memory_space<vmem>>, vector<8x32xf32>
    %cst_14 = arith.constant 0.000000e+00 : f32
    %15 = vector.broadcast %cst_14 : f32 to vector<8x8xf32>
    %cst_15 = arith.constant 0.000000e+00 : f32
    %16 = vector.broadcast %cst_15 : f32 to vector<8x8xf32>
    %17 = vector.extract_strided_slice %13 {offsets = [0, 0], sizes = [8, 32], strides = [1, 1]} : vector<64x32xf32> to vector<8x32xf32>
    %cst_16 = arith.constant dense<0.000000e+00> : vector<8x32xf32>
    %18 = tpu.matmul %15, %14, %cst_16 {dimension_numbers = #tpu.dot_dimension_numbers<[1], [0], [0], [1], [0, 0, 1, 1], [], []>} : vector<8x8xf32>, vector<8x32xf32>, vector<8x32xf32> -> vector<8x32xf32>
    %19 = arith.addf %17, %18 : vector<8x32xf32>
    %20 = arith.negf %19 : vector<8x32xf32>
    %21 = math.exp %20 : vector<8x32xf32>
    %cst_17 = arith.constant 1.000000e+00 : f32
    %22 = vector.broadcast %cst_17 : f32 to vector<8x32xf32>
    %23 = arith.addf %22, %21 : vector<8x32xf32>
    %24 = arith.divf %22, %23 : vector<8x32xf32>
    %25 = vector.extract_strided_slice %19 {offsets = [0, 16], sizes = [8, 8], strides = [1, 1]} : vector<8x32xf32> to vector<8x8xf32>
    %26 = math.tanh %25 : vector<8x8xf32>
    %27 = vector.extract_strided_slice %24 {offsets = [0, 0], sizes = [8, 8], strides = [1, 1]} : vector<8x32xf32> to vector<8x8xf32>
    %28 = vector.extract_strided_slice %24 {offsets = [0, 8], sizes = [8, 8], strides = [1, 1]} : vector<8x32xf32> to vector<8x8xf32>
    %29 = vector.extract_strided_slice %24 {offsets = [0, 24], sizes = [8, 8], strides = [1, 1]} : vector<8x32xf32> to vector<8x8xf32>
    %30 = arith.mulf %28, %16 : vector<8x8xf32>
    %31 = arith.mulf %27, %26 : vector<8x8xf32>
    %32 = arith.addf %30, %31 : vector<8x8xf32>
    %33 = math.tanh %32 : vector<8x8xf32>
    %34 = arith.mulf %29, %33 : vector<8x8xf32>
    %35 = vector.extract_strided_slice %13 {offsets = [8, 0], sizes = [8, 32], strides = [1, 1]} : vector<64x32xf32> to vector<8x32xf32>
    %cst_18 = arith.constant dense<0.000000e+00> : vector<8x32xf32>
    %36 = tpu.matmul %34, %14, %cst_18 {dimension_numbers = #tpu.dot_dimension_numbers<[1], [0], [0], [1], [0, 0, 1, 1], [], []>} : vector<8x8xf32>, vector<8x32xf32>, vector<8x32xf32> -> vector<8x32xf32>
    %37 = arith.addf %35, %36 : vector<8x32xf32>
    %38 = arith.negf %37 : vector<8x32xf32>
    %39 = math.exp %38 : vector<8x32xf32>
    %cst_19 = arith.constant 1.000000e+00 : f32
    %40 = vector.broadcast %cst_19 : f32 to vector<8x32xf32>
    %41 = arith.addf %40, %39 : vector<8x32xf32>
    %42 = arith.divf %40, %41 : vector<8x32xf32>
    %43 = vector.extract_strided_slice %37 {offsets = [0, 16], sizes = [8, 8], strides = [1, 1]} : vector<8x32xf32> to vector<8x8xf32>
    %44 = math.tanh %43 : vector<8x8xf32>
    %45 = vector.extract_strided_slice %42 {offsets = [0, 0], sizes = [8, 8], strides = [1, 1]} : vector<8x32xf32> to vector<8x8xf32>
    %46 = vector.extract_strided_slice %42 {offsets = [0, 8], sizes = [8, 8], strides = [1, 1]} : vector<8x32xf32> to vector<8x8xf32>
    %47 = vector.extract_strided_slice %42 {offsets = [0, 24], sizes = [8, 8], strides = [1, 1]} : vector<8x32xf32> to vector<8x8xf32>
    %48 = arith.mulf %46, %32 : vector<8x8xf32>
    %49 = arith.mulf %45, %44 : vector<8x8xf32>
    %50 = arith.addf %48, %49 : vector<8x8xf32>
    %51 = math.tanh %50 : vector<8x8xf32>
    %52 = arith.mulf %47, %51 : vector<8x8xf32>
    %53 = vector.extract_strided_slice %13 {offsets = [16, 0], sizes = [8, 32], strides = [1, 1]} : vector<64x32xf32> to vector<8x32xf32>
    %cst_20 = arith.constant dense<0.000000e+00> : vector<8x32xf32>
    %54 = tpu.matmul %52, %14, %cst_20 {dimension_numbers = #tpu.dot_dimension_numbers<[1], [0], [0], [1], [0, 0, 1, 1], [], []>} : vector<8x8xf32>, vector<8x32xf32>, vector<8x32xf32> -> vector<8x32xf32>
    %55 = arith.addf %53, %54 : vector<8x32xf32>
    %56 = arith.negf %55 : vector<8x32xf32>
    %57 = math.exp %56 : vector<8x32xf32>
    %cst_21 = arith.constant 1.000000e+00 : f32
    %58 = vector.broadcast %cst_21 : f32 to vector<8x32xf32>
    %59 = arith.addf %58, %57 : vector<8x32xf32>
    %60 = arith.divf %58, %59 : vector<8x32xf32>
    %61 = vector.extract_strided_slice %55 {offsets = [0, 16], sizes = [8, 8], strides = [1, 1]} : vector<8x32xf32> to vector<8x8xf32>
    %62 = math.tanh %61 : vector<8x8xf32>
    %63 = vector.extract_strided_slice %60 {offsets = [0, 0], sizes = [8, 8], strides = [1, 1]} : vector<8x32xf32> to vector<8x8xf32>
    %64 = vector.extract_strided_slice %60 {offsets = [0, 8], sizes = [8, 8], strides = [1, 1]} : vector<8x32xf32> to vector<8x8xf32>
    %65 = vector.extract_strided_slice %60 {offsets = [0, 24], sizes = [8, 8], strides = [1, 1]} : vector<8x32xf32> to vector<8x8xf32>
    %66 = arith.mulf %64, %50 : vector<8x8xf32>
    %67 = arith.mulf %63, %62 : vector<8x8xf32>
    %68 = arith.addf %66, %67 : vector<8x8xf32>
    %69 = math.tanh %68 : vector<8x8xf32>
    %70 = arith.mulf %65, %69 : vector<8x8xf32>
    %71 = vector.extract_strided_slice %13 {offsets = [24, 0], sizes = [8, 32], strides = [1, 1]} : vector<64x32xf32> to vector<8x32xf32>
    %cst_22 = arith.constant dense<0.000000e+00> : vector<8x32xf32>
    %72 = tpu.matmul %70, %14, %cst_22 {dimension_numbers = #tpu.dot_dimension_numbers<[1], [0], [0], [1], [0, 0, 1, 1], [], []>} : vector<8x8xf32>, vector<8x32xf32>, vector<8x32xf32> -> vector<8x32xf32>
    %73 = arith.addf %71, %72 : vector<8x32xf32>
    %74 = arith.negf %73 : vector<8x32xf32>
    %75 = math.exp %74 : vector<8x32xf32>
    %cst_23 = arith.constant 1.000000e+00 : f32
    %76 = vector.broadcast %cst_23 : f32 to vector<8x32xf32>
    %77 = arith.addf %76, %75 : vector<8x32xf32>
    %78 = arith.divf %76, %77 : vector<8x32xf32>
    %79 = vector.extract_strided_slice %73 {offsets = [0, 16], sizes = [8, 8], strides = [1, 1]} : vector<8x32xf32> to vector<8x8xf32>
    %80 = math.tanh %79 : vector<8x8xf32>
    %81 = vector.extract_strided_slice %78 {offsets = [0, 0], sizes = [8, 8], strides = [1, 1]} : vector<8x32xf32> to vector<8x8xf32>
    %82 = vector.extract_strided_slice %78 {offsets = [0, 8], sizes = [8, 8], strides = [1, 1]} : vector<8x32xf32> to vector<8x8xf32>
    %83 = vector.extract_strided_slice %78 {offsets = [0, 24], sizes = [8, 8], strides = [1, 1]} : vector<8x32xf32> to vector<8x8xf32>
    %84 = arith.mulf %82, %68 : vector<8x8xf32>
    %85 = arith.mulf %81, %80 : vector<8x8xf32>
    %86 = arith.addf %84, %85 : vector<8x8xf32>
    %87 = math.tanh %86 : vector<8x8xf32>
    %88 = arith.mulf %83, %87 : vector<8x8xf32>
    %89 = vector.extract_strided_slice %13 {offsets = [32, 0], sizes = [8, 32], strides = [1, 1]} : vector<64x32xf32> to vector<8x32xf32>
    %cst_24 = arith.constant dense<0.000000e+00> : vector<8x32xf32>
    %90 = tpu.matmul %88, %14, %cst_24 {dimension_numbers = #tpu.dot_dimension_numbers<[1], [0], [0], [1], [0, 0, 1, 1], [], []>} : vector<8x8xf32>, vector<8x32xf32>, vector<8x32xf32> -> vector<8x32xf32>
    %91 = arith.addf %89, %90 : vector<8x32xf32>
    %92 = arith.negf %91 : vector<8x32xf32>
    %93 = math.exp %92 : vector<8x32xf32>
    %cst_25 = arith.constant 1.000000e+00 : f32
    %94 = vector.broadcast %cst_25 : f32 to vector<8x32xf32>
    %95 = arith.addf %94, %93 : vector<8x32xf32>
    %96 = arith.divf %94, %95 : vector<8x32xf32>
    %97 = vector.extract_strided_slice %91 {offsets = [0, 16], sizes = [8, 8], strides = [1, 1]} : vector<8x32xf32> to vector<8x8xf32>
    %98 = math.tanh %97 : vector<8x8xf32>
    %99 = vector.extract_strided_slice %96 {offsets = [0, 0], sizes = [8, 8], strides = [1, 1]} : vector<8x32xf32> to vector<8x8xf32>
    %100 = vector.extract_strided_slice %96 {offsets = [0, 8], sizes = [8, 8], strides = [1, 1]} : vector<8x32xf32> to vector<8x8xf32>
    %101 = vector.extract_strided_slice %96 {offsets = [0, 24], sizes = [8, 8], strides = [1, 1]} : vector<8x32xf32> to vector<8x8xf32>
    %102 = arith.mulf %100, %86 : vector<8x8xf32>
    %103 = arith.mulf %99, %98 : vector<8x8xf32>
    %104 = arith.addf %102, %103 : vector<8x8xf32>
    %105 = math.tanh %104 : vector<8x8xf32>
    %106 = arith.mulf %101, %105 : vector<8x8xf32>
    %107 = vector.extract_strided_slice %13 {offsets = [40, 0], sizes = [8, 32], strides = [1, 1]} : vector<64x32xf32> to vector<8x32xf32>
    %cst_26 = arith.constant dense<0.000000e+00> : vector<8x32xf32>
    %108 = tpu.matmul %106, %14, %cst_26 {dimension_numbers = #tpu.dot_dimension_numbers<[1], [0], [0], [1], [0, 0, 1, 1], [], []>} : vector<8x8xf32>, vector<8x32xf32>, vector<8x32xf32> -> vector<8x32xf32>
    %109 = arith.addf %107, %108 : vector<8x32xf32>
    %110 = arith.negf %109 : vector<8x32xf32>
    %111 = math.exp %110 : vector<8x32xf32>
    %cst_27 = arith.constant 1.000000e+00 : f32
    %112 = vector.broadcast %cst_27 : f32 to vector<8x32xf32>
    %113 = arith.addf %112, %111 : vector<8x32xf32>
    %114 = arith.divf %112, %113 : vector<8x32xf32>
    %115 = vector.extract_strided_slice %109 {offsets = [0, 16], sizes = [8, 8], strides = [1, 1]} : vector<8x32xf32> to vector<8x8xf32>
    %116 = math.tanh %115 : vector<8x8xf32>
    %117 = vector.extract_strided_slice %114 {offsets = [0, 0], sizes = [8, 8], strides = [1, 1]} : vector<8x32xf32> to vector<8x8xf32>
    %118 = vector.extract_strided_slice %114 {offsets = [0, 8], sizes = [8, 8], strides = [1, 1]} : vector<8x32xf32> to vector<8x8xf32>
    %119 = vector.extract_strided_slice %114 {offsets = [0, 24], sizes = [8, 8], strides = [1, 1]} : vector<8x32xf32> to vector<8x8xf32>
    %120 = arith.mulf %118, %104 : vector<8x8xf32>
    %121 = arith.mulf %117, %116 : vector<8x8xf32>
    %122 = arith.addf %120, %121 : vector<8x8xf32>
    %123 = math.tanh %122 : vector<8x8xf32>
    %124 = arith.mulf %119, %123 : vector<8x8xf32>
    %125 = vector.extract_strided_slice %13 {offsets = [48, 0], sizes = [8, 32], strides = [1, 1]} : vector<64x32xf32> to vector<8x32xf32>
    %cst_28 = arith.constant dense<0.000000e+00> : vector<8x32xf32>
    %126 = tpu.matmul %124, %14, %cst_28 {dimension_numbers = #tpu.dot_dimension_numbers<[1], [0], [0], [1], [0, 0, 1, 1], [], []>} : vector<8x8xf32>, vector<8x32xf32>, vector<8x32xf32> -> vector<8x32xf32>
    %127 = arith.addf %125, %126 : vector<8x32xf32>
    %128 = arith.negf %127 : vector<8x32xf32>
    %129 = math.exp %128 : vector<8x32xf32>
    %cst_29 = arith.constant 1.000000e+00 : f32
    %130 = vector.broadcast %cst_29 : f32 to vector<8x32xf32>
    %131 = arith.addf %130, %129 : vector<8x32xf32>
    %132 = arith.divf %130, %131 : vector<8x32xf32>
    %133 = vector.extract_strided_slice %127 {offsets = [0, 16], sizes = [8, 8], strides = [1, 1]} : vector<8x32xf32> to vector<8x8xf32>
    %134 = math.tanh %133 : vector<8x8xf32>
    %135 = vector.extract_strided_slice %132 {offsets = [0, 0], sizes = [8, 8], strides = [1, 1]} : vector<8x32xf32> to vector<8x8xf32>
    %136 = vector.extract_strided_slice %132 {offsets = [0, 8], sizes = [8, 8], strides = [1, 1]} : vector<8x32xf32> to vector<8x8xf32>
    %137 = vector.extract_strided_slice %132 {offsets = [0, 24], sizes = [8, 8], strides = [1, 1]} : vector<8x32xf32> to vector<8x8xf32>
    %138 = arith.mulf %136, %122 : vector<8x8xf32>
    %139 = arith.mulf %135, %134 : vector<8x8xf32>
    %140 = arith.addf %138, %139 : vector<8x8xf32>
    %141 = math.tanh %140 : vector<8x8xf32>
    %142 = arith.mulf %137, %141 : vector<8x8xf32>
    %143 = vector.extract_strided_slice %13 {offsets = [56, 0], sizes = [8, 32], strides = [1, 1]} : vector<64x32xf32> to vector<8x32xf32>
    %cst_30 = arith.constant dense<0.000000e+00> : vector<8x32xf32>
    %144 = tpu.matmul %142, %14, %cst_30 {dimension_numbers = #tpu.dot_dimension_numbers<[1], [0], [0], [1], [0, 0, 1, 1], [], []>} : vector<8x8xf32>, vector<8x32xf32>, vector<8x32xf32> -> vector<8x32xf32>
    %145 = arith.addf %143, %144 : vector<8x32xf32>
    %146 = arith.negf %145 : vector<8x32xf32>
    %147 = math.exp %146 : vector<8x32xf32>
    %cst_31 = arith.constant 1.000000e+00 : f32
    %148 = vector.broadcast %cst_31 : f32 to vector<8x32xf32>
    %149 = arith.addf %148, %147 : vector<8x32xf32>
    %150 = arith.divf %148, %149 : vector<8x32xf32>
    %151 = vector.extract_strided_slice %145 {offsets = [0, 16], sizes = [8, 8], strides = [1, 1]} : vector<8x32xf32> to vector<8x8xf32>
    %152 = math.tanh %151 : vector<8x8xf32>
    %153 = vector.extract_strided_slice %150 {offsets = [0, 0], sizes = [8, 8], strides = [1, 1]} : vector<8x32xf32> to vector<8x8xf32>
    %154 = vector.extract_strided_slice %150 {offsets = [0, 8], sizes = [8, 8], strides = [1, 1]} : vector<8x32xf32> to vector<8x8xf32>
    %155 = vector.extract_strided_slice %150 {offsets = [0, 24], sizes = [8, 8], strides = [1, 1]} : vector<8x32xf32> to vector<8x8xf32>
    %156 = arith.mulf %154, %140 : vector<8x8xf32>
    %157 = arith.mulf %153, %152 : vector<8x8xf32>
    %158 = arith.addf %156, %157 : vector<8x8xf32>
    %159 = math.tanh %158 : vector<8x8xf32>
    %160 = arith.mulf %155, %159 : vector<8x8xf32>
    %c0_32 = arith.constant 0 : index
    %c0_33 = arith.constant 0 : index
    %161 = vector.load %arg5[%c0_32, %c0_33] : memref<8x4xf32, #tpu.memory_space<vmem>>, vector<8x4xf32>
    %cst_34 = arith.constant dense<0.000000e+00> : vector<8x4xf32>
    %162 = tpu.matmul %160, %161, %cst_34 {dimension_numbers = #tpu.dot_dimension_numbers<[1], [0], [0], [1], [0, 0, 1, 1], [], []>} : vector<8x8xf32>, vector<8x4xf32>, vector<8x4xf32> -> vector<8x4xf32>
    %163 = arith.addf %162, %7 : vector<8x4xf32>
    %c0_35 = arith.constant 0 : index
    %c0_36 = arith.constant 0 : index
    %164 = vector.load %arg8[%c0_35, %c0_36] : memref<8x4xf32, #tpu.memory_space<vmem>>, vector<8x4xf32>
    %165 = arith.addf %163, %164 : vector<8x4xf32>
    %cst_37 = arith.constant 1.000000e+00 : f32
    %166 = vector.broadcast %cst_37 : f32 to vector<8x4xf32>
    %167 = arith.mulf %165, %166 : vector<8x4xf32>
    %cst_38 = arith.constant dense<0xFF800000> : vector<8xf32>
    %168 = vector.multi_reduction <maximumf>, %167, %cst_38 [1] : vector<8x4xf32> to vector<8xf32>
    %169 = vector.shape_cast %168 : vector<8xf32> to vector<8x1xf32>
    %170 = vector.broadcast %169 : vector<8x1xf32> to vector<8x4xf32>
    %171 = arith.subf %167, %170 : vector<8x4xf32>
    %172 = math.exp %171 : vector<8x4xf32>
    %cst_39 = arith.constant dense<0.000000e+00> : vector<8xf32>
    %173 = vector.multi_reduction <add>, %172, %cst_39 [1] : vector<8x4xf32> to vector<8xf32>
    %174 = vector.shape_cast %173 : vector<8xf32> to vector<8x1xf32>
    %175 = tpu.reciprocal %174 {approx = true} : vector<8x1xf32> -> vector<8x1xf32>
    %176 = vector.broadcast %175 : vector<8x1xf32> to vector<8x4xf32>
    %177 = arith.mulf %172, %176 : vector<8x4xf32>
    %178 = arith.mulf %6, %177 : vector<8x4xf32>
    %cst_40 = arith.constant dense<0.000000e+00> : vector<8xf32>
    %179 = vector.multi_reduction <add>, %178, %cst_40 [1] : vector<8x4xf32> to vector<8xf32>
    %180 = vector.shape_cast %179 : vector<8xf32> to vector<8x1xf32>
    %cst_41 = arith.constant 0.000000e+00 : f32
    %181 = vector.broadcast %cst_41 : f32 to vector<8x119xf32>
    %182 = tpu.concatenate %6, %177, %180, %181 in 1 : vector<8x4xf32>, vector<8x4xf32>, vector<8x1xf32>, vector<8x119xf32> -> vector<8x128xf32>
    %c0_42 = arith.constant 0 : index
    %c0_43 = arith.constant 0 : index
    %183 = vector.load %arg9[%c0_42, %c0_43] : memref<8x128xf32, #tpu.memory_space<vmem>>, vector<8x128xf32>
    tpu.vector_store %arg9[%c0_42, %c0_43], %182 {strides = array<i32>} : memref<8x128xf32, #tpu.memory_space<vmem>>, vector<8x128xf32>,
    return
  }
}

</mosaic_0001>

<bundles_post_ra>
// kernel: tpu_custom_call.1
= control target key start
LH: loop header
LB: loop body
LE: loop exit
PB: predicated region body
PF: predicated region fallthrough
CT: control target
= control target key end

     0   :  { %vm158_vm0 = vcmask 1043456   ;;  %v1416_v2 = vmov 0.0|0.0   ;;  %vm1417_vm1 = vmmov 0   ;;  %v1418_v4 = vmov 0.0   ;;  %s1656_s0 = inlined_call_operand.vmem [shape: f32[8,16], index: 0, kind: input, shape index: {}]   ;;  %s1657_s1 = inlined_call_operand.vmem [shape: f32[64,4], index: 1, kind: input, shape index: {}]   ;;  %s1658_s2 = inlined_call_operand.vmem [shape: f32[4,32], index: 2, kind: input, shape index: {}]   ;;  %s1659_s3 = inlined_call_operand.vmem [shape: f32[8,32], index: 3, kind: input, shape index: {}]   ;;  %s1660_s4 = inlined_call_operand.vmem [shape: f32[1,32], index: 4, kind: input, shape index: {}]   ;;  %s1661_s5 = inlined_call_operand.vmem [shape: f32[8,4], index: 5, kind: input, shape index: {}]   ;;  %s1662_s6 = inlined_call_operand.vmem [shape: f32[16,8], index: 6, kind: input, shape index: {}]   ;;  %s1663_s7 = inlined_call_operand.vmem [shape: f32[1,8], index: 7, kind: input, shape index: {}]   ;;  %s1664_s8 = inlined_call_operand.vmem [shape: f32[8,4], index: 8, kind: input, shape index: {}]   ;;  %s1665_s9 = inlined_call_operand.hbm [shape: f32[8,128], index: 9, kind: output, shape index: {}]  }
   0x1   :  { %v34_v0 = vld [vmem:[%s1662_s6] sm:$0xff]  ;;  %v35_v1 = vld [vmem:[%s1662_s6 + $0x8] sm:$0xff]  ;;  %1311 = vmatprep.subr.bf16.mxu0 %v1416_v2  ;;  %1249 = vmatprep.mubr.msk.f32.mxu0 %vm1417_vm1, %v1418_v4  ;;  %vm133_vm2 = vcmask 31744   ;;  %vm43_vm3 = vcmask 130048  }
   0x2   :  { %v1312_v3 = vpack.c.bf16 %v35_v1, %v34_v0  ;;  %v125_v5 = vld [vmem:[%s1658_s2] sm:$0xf]  ;;  %v118_v7 = vld [vmem:[%s1657_s1 + $0x8] sm:$0xff] }
   0x3   :  { %v117_v6 = vld [vmem:[%s1657_s1] sm:$0xff]  ;;  %1252 = vmatprep.subr.msk.mxu1 %vm158_vm0, %v125_v5 }
   0x4   :  { %1254 = vmatprep.mubr.msk.f32.mxu1 %vm133_vm2, %v117_v6  ;;  %1313 = vmatpush3.bf16.msra.mxu0 %v1312_v3  ;;  %v33_v8 = vld [vmem:[%s1656_s0] sm:$0xff] }
   0x5   :  { %1253 = vmatpush3.msk.msra.mxu1 %vm158_vm0, %v125_v5 }
   0x6   :  { %14 = vsyncpa [#allocation3], 0  ;;  %1266 = vmatprep.subr.mxu0 %v1418_v4  ;;  %1255 = vmatmul.mubr.msk.f32.vlgmr.msra.gmra.mrb[0].mxu1 %vm133_vm2, %v118_v7  ;;  %v1504_v9 = vld [vmem:[%s1659_s3] sm:$0xff]  ;;  %s1419_s21 = smov 112   ;;  %s1421_s22 = smov 16   ;;  %vm268_vm4 = vcmask 64512  }
   0x7   :  { %1281 = vmatprep.subr.mxu1 %v1418_v4  ;;  %1250 = vmatmul.mubr.msk.f32.vlgmr.msra.gmra.mrb[0].mxu0 %vm43_vm3, %v33_v8  ;;  %v1521_v11 = vld [vmem:[%s1660_s4] ss:$0 sm:$0xff]  ;;  %s1420_s4 = smov 8   ;;  %s1422_s23 = smov 104   ;;  %v119_v47 = vld [vmem:[%s1657_s1 + $0x10] sm:$0xff]  ;;  %v120_v48 = vld [vmem:[%s1657_s1 + $0x18] sm:$0xff] }
   0x8   :  { %1282 = vmatpush3.msra.mxu1 %v1504_v9  ;;  %1267 = vmatpush3.msra.mxu0 %v1504_v9  ;;  %v121_v6 = vld [vmem:[%s1657_s1 + $0x20] sm:$0xff]  ;;  %v122_v7 = vld [vmem:[%s1657_s1 + $0x28] sm:$0xff]  ;;  %v123_v8 = vld [vmem:[%s1657_s1 + $0x30] sm:$0xff]  ;;  %s1423_s17 = smov 124   ;;  %vm1170_vm5 = vcmask 72704  }
   0x9   :  { %1268 = vmatprep.mubr.msk.f32.mxu0 %vm1417_vm1, %v1418_v4  ;;  %1271 = vmatprep.subr.mxu0 %v1418_v4 }
   0xa   :  { %1291 = vmatprep.subr.mxu1 %v1418_v4  ;;  %1257 = vmatprep.mubr.msk.f32.mxu1 %vm133_vm2, %v119_v47 }
   0xb   :  { %1269 = vmatmul.mubr.f32.vlgmr.msra.gmra.mrb[2].mxu0 %v1418_v4  ;;  %1258 = vmatmul.mubr.msk.f32.gmra.mrb[2].mxu1 %vm133_vm2, %v120_v48 }
   0xc   :  { %1272 = vmatpush3.msra.mxu0 %v1504_v9  ;;  %1273 = vmatprep.mubr.msk.f32.mxu0 %vm1417_vm1, %v1418_v4 }
   0xd   :  { %1276 = vmatprep.subr.mxu0 %v1418_v4  ;;  %1260 = vmatprep.mubr.msk.f32.mxu1 %vm133_vm2, %v121_v6 }
   0xf   :  { %1261 = vmatmul.mubr.msk.f32.gmra.mrb[4].mxu1 %vm133_vm2, %v122_v7 }
  0x10   :  { %1263 = vmatprep.mubr.msk.f32.mxu1 %vm133_vm2, %v123_v8 }
  0xd9   :  { %v1256_v10 = vpop.f32.mrb[0].mxu1 }
  0xda   :  { %v228_v12 = vpop.f32.mrb[1].mxu1  ;;  %v1523_v13 = vpop.f32.mrb[0].mxu0  ;;  %v234_v33 = vadd.f32 %v1256_v10, %v1521_v11  ;;  %v124_v10 = vld [vmem:[%s1657_s1 + $0x38] sm:$0xff] }
  0xdb   :  { %v1251_v14 = vpop.f32.mrb[1].mxu0  ;;  %v229_v15 = vadd.f32 %v1521_v11, %v228_v12  ;;  %1264 = vmatmul.mubr.msk.f32.gmra.mrb[6].mxu1 %vm133_vm2, %v124_v10 }
  0xdc   :  { %1283 = vmatprep.mubr.msk.f32.mxu1 %vm1417_vm1, %v1418_v4 }
  0xde   :  { %v338_v16 = vpop.f32.mrb[2].mxu0  ;;  %v1259_v52 = vpop.f32.mrb[2].mxu1 }
  0xdf   :  { %v342_v17 = vadd.f32 %v338_v16, %v229_v15  ;;  %v1270_v18 = vpop.f32.mrb[3].mxu0  ;;  %v238_v53 = vpop.f32.mrb[3].mxu1 }
  0xe0   :  { %v239_v55 = vadd.f32 %v1521_v11, %v238_v53 }
  0xe1   :  { %1324 = vtanh.f32 %v342_v17  ;;  %v1199_v20 = vmul.f32 -1.442695, %v342_v17 }
  0xe2   :  { %v1576_v16 = vpop.f32.mrb[4].mxu1 }
  0xe3   :  { %1326 = vpow2.f32 %v1199_v20  ;;  %v248_v17 = vpop.f32.mrb[5].mxu1 }
  0xeb   :  { %v1325_v19 = vpop.eup %1324 }
  0xec   :  { %352 = vrot.lane.b32.xlu0 %v1325_v19, %s1419_s21 }
  0xed   :  { %v1327_v21 = vpop.eup %1326 }
  0xee   :  { %v346_v22 = vadd.f32 1.0, %v1327_v21  ;;  %v244_v21 = vadd.f32 %v1259_v52, %v1521_v11 }
  0xf0   :  { %1328 = vrcp.f32 %v346_v22 }
  0xfa   :  { %v1329_v23 = vpop.eup %1328 }
  0xfb   :  { %v350_v26 = vmul.f32 0.0, %v1329_v23 }
 0x15e   :  { %v353_v24 = vpop.permute.xlu0 %352 }
 0x15f   :  { %v355_v25 = vmul.f32 %v1329_v23, %v353_v24 }
 0x161   :  { %357 = vrot.lane.b32.xlu0 %v355_v25, %s1420_s4 }
 0x1ae   :  { %v1578_v18 = vpop.f32.mrb[6].mxu1 }
 0x1af   :  { %v1580_v19 = vpop.f32.mrb[7].mxu1 }
 0x1d3   :  { %v358_v27 = vpop.permute.xlu0 %357 }
 0x1d4   :  { %v360_v28 = vadd.f32 %v358_v27, %v350_v26 }
 0x1d6   :  { %1330 = vtanh.f32 %v360_v28 }
 0x1e0   :  { %v1331_v29 = vpop.eup %1330 }
 0x1e1   :  { %363 = vrot.lane.b32.xlu1 %v1331_v29, %s1421_s22 }
 0x253   :  { %v364_v30 = vpop.permute.xlu1 %363 }
 0x254   :  { %v366_v31 = vmul.f32 %v1329_v23, %v364_v30 }
 0x256   :  { %368 = vrot.lane.b32.xlu1 %v366_v31, %s1422_s23 }
 0x2c8   :  { %v369_v32 = vpop.permute.xlu1 %368 }
 0x2c9   :  { %1274 = vmatmul.mubr.msk.f32.vlgmr.msra.gmra.mrb[4].mxu0 %vm268_vm4, %v369_v32 }
 0x2ca   :  { %1277 = vmatpush3.msra.mxu0 %v1504_v9  ;;  %1278 = vmatprep.mubr.msk.f32.mxu0 %vm1417_vm1, %v1418_v4 }
 0x2cb   :  { %1286 = vmatprep.subr.mxu0 %v1418_v4 }
 0x39c   :  { %v438_v34 = vpop.f32.mrb[4].mxu0 }
 0x39d   :  { %v442_v35 = vadd.f32 %v438_v34, %v234_v33  ;;  %v1275_v36 = vpop.f32.mrb[5].mxu0 }
 0x39f   :  { %1332 = vtanh.f32 %v442_v35  ;;  %v1201_v38 = vmul.f32 -1.442695, %v442_v35 }
 0x3a1   :  { %1334 = vpow2.f32 %v1201_v38 }
 0x3a9   :  { %v1333_v37 = vpop.eup %1332 }
 0x3aa   :  { %452 = vrot.lane.b32.xlu0 %v1333_v37, %s1419_s21 }
 0x3ab   :  { %v1335_v39 = vpop.eup %1334 }
 0x3ac   :  { %v446_v40 = vadd.f32 1.0, %v1335_v39  ;;  %v249_v39 = vadd.f32 %v1521_v11, %v248_v17 }
 0x3ae   :  { %1336 = vrcp.f32 %v446_v40 }
 0x3b8   :  { %v1337_v41 = vpop.eup %1336 }
 0x3b9   :  { %v450_v44 = vmul.f32 %v1337_v41, %v360_v28 }
 0x41c   :  { %v453_v42 = vpop.permute.xlu0 %452 }
 0x41d   :  { %v455_v43 = vmul.f32 %v1337_v41, %v453_v42 }
 0x41f   :  { %457 = vrot.lane.b32.xlu1 %v455_v43, %s1420_s4 }
 0x491   :  { %v458_v45 = vpop.permute.xlu1 %457 }
 0x492   :  { %v460_v46 = vadd.f32 %v458_v45, %v450_v44 }
 0x494   :  { %1338 = vtanh.f32 %v460_v46 }
 0x49e   :  { %v1339_v49 = vpop.eup %1338 }
 0x49f   :  { %463 = vrot.lane.b32.xlu0 %v1339_v49, %s1421_s22 }
 0x511   :  { %v464_v50 = vpop.permute.xlu0 %463 }
 0x512   :  { %v466_v51 = vmul.f32 %v1337_v41, %v464_v50 }
 0x514   :  { %468 = vrot.lane.b32.xlu1 %v466_v51, %s1422_s23 }
 0x586   :  { %v469_v54 = vpop.permute.xlu1 %468 }
 0x587   :  { %1279 = vmatmul.mubr.msk.f32.vlgmr.msra.gmra.mrb[6].mxu0 %vm268_vm4, %v469_v54 }
 0x588   :  { %1287 = vmatpush3.msra.mxu0 %v1504_v9  ;;  %1288 = vmatprep.mubr.msk.f32.mxu0 %vm1417_vm1, %v1418_v4 }
 0x589   :  { %1296 = vmatprep.subr.mxu0 %v1418_v4 }
 0x65a   :  { %v538_v56 = vpop.f32.mrb[6].mxu0 }
 0x65b   :  { %v542_v57 = vadd.f32 %v538_v56, %v239_v55  ;;  %v1280_v58 = vpop.f32.mrb[7].mxu0 }
 0x65d   :  { %1340 = vtanh.f32 %v542_v57  ;;  %v1203_v60 = vmul.f32 -1.442695, %v542_v57  ;;  %v254_v57 = vadd.f32 %v1576_v16, %v1521_v11 }
 0x65f   :  { %1342 = vpow2.f32 %v1203_v60 }
 0x667   :  { %v1341_v59 = vpop.eup %1340 }
 0x668   :  { %552 = vrot.lane.b32.xlu0 %v1341_v59, %s1419_s21 }
 0x669   :  { %v1343_v61 = vpop.eup %1342 }
 0x66a   :  { %v546_v62 = vadd.f32 1.0, %v1343_v61 }
 0x66c   :  { %1344 = vrcp.f32 %v546_v62 }
 0x676   :  { %v1345_v63 = vpop.eup %1344 }
 0x677   :  { %v550_v2 = vmul.f32 %v1345_v63, %v460_v46 }
 0x6da   :  { %v553_v0 = vpop.permute.xlu0 %552 }
 0x6db   :  { %v555_v1 = vmul.f32 %v1345_v63, %v553_v0 }
 0x6dd   :  { %557 = vrot.lane.b32.xlu1 %v555_v1, %s1420_s4 }
 0x74f   :  { %v558_v3 = vpop.permute.xlu1 %557 }
 0x750   :  { %v560_v5 = vadd.f32 %v558_v3, %v550_v2 }
 0x752   :  { %1346 = vtanh.f32 %v560_v5 }
 0x75c   :  { %v1347_v12 = vpop.eup %1346 }
 0x75d   :  { %563 = vrot.lane.b32.xlu0 %v1347_v12, %s1421_s22 }
 0x7cf   :  { %v564_v14 = vpop.permute.xlu0 %563 }
 0x7d0   :  { %v566_v15 = vmul.f32 %v1345_v63, %v564_v14  ;;  %v259_v14 = vadd.f32 %v1521_v11, %v1580_v19 }
 0x7d2   :  { %568 = vrot.lane.b32.xlu1 %v566_v15, %s1422_s23 }
 0x844   :  { %v569_v20 = vpop.permute.xlu1 %568 }
 0x845   :  { %1284 = vmatmul.mubr.msk.f32.vlgmr.msra.gmra.mrb[8].mxu1 %vm268_vm4, %v569_v20 }
 0x846   :  { %1292 = vmatpush3.msra.mxu1 %v1504_v9  ;;  %1293 = vmatprep.mubr.msk.f32.mxu1 %vm1417_vm1, %v1418_v4 }
 0x847   :  { %1301 = vmatprep.subr.mxu1 %v1418_v4 }
 0x918   :  { %v638_v22 = vpop.f32.mrb[8].mxu1 }
 0x919   :  { %v642_v23 = vadd.f32 %v638_v22, %v244_v21  ;;  %v1285_v24 = vpop.f32.mrb[9].mxu1 }
 0x91b   :  { %1348 = vtanh.f32 %v642_v23  ;;  %v1205_v26 = vmul.f32 -1.442695, %v642_v23 }
 0x91d   :  { %1350 = vpow2.f32 %v1205_v26 }
 0x925   :  { %v1349_v25 = vpop.eup %1348 }
 0x926   :  { %652 = vrot.lane.b32.xlu0 %v1349_v25, %s1419_s21 }
 0x927   :  { %v1351_v27 = vpop.eup %1350 }
 0x928   :  { %v646_v28 = vadd.f32 1.0, %v1351_v27 }
 0x92a   :  { %1352 = vrcp.f32 %v646_v28 }
 0x934   :  { %v1353_v29 = vpop.eup %1352 }
 0x935   :  { %v650_v32 = vmul.f32 %v1353_v29, %v560_v5 }
 0x998   :  { %v653_v30 = vpop.permute.xlu0 %652 }
 0x999   :  { %v655_v31 = vmul.f32 %v1353_v29, %v653_v30 }
 0x99b   :  { %657 = vrot.lane.b32.xlu1 %v655_v31, %s1420_s4 }
 0xa0d   :  { %v658_v33 = vpop.permute.xlu1 %657 }
 0xa0e   :  { %v660_v34 = vadd.f32 %v658_v33, %v650_v32  ;;  %v264_v32 = vadd.f32 %v1578_v18, %v1521_v11  ;;  %v1067_v18 = vld [vmem:[%s1661_s5] sm:$0xff] }
 0xa10   :  { %1354 = vtanh.f32 %v660_v34 }
 0xa1a   :  { %v1355_v35 = vpop.eup %1354 }
 0xa1b   :  { %663 = vrot.lane.b32.xlu0 %v1355_v35, %s1421_s22 }
 0xa8d   :  { %v664_v36 = vpop.permute.xlu0 %663 }
 0xa8e   :  { %v666_v37 = vmul.f32 %v1353_v29, %v664_v36 }
 0xa90   :  { %668 = vrot.lane.b32.xlu1 %v666_v37, %s1422_s23 }
 0xb02   :  { %v669_v38 = vpop.permute.xlu1 %668 }
 0xb03   :  { %1289 = vmatmul.mubr.msk.f32.vlgmr.msra.gmra.mrb[8].mxu0 %vm268_vm4, %v669_v38 }
 0xb04   :  { %1297 = vmatpush3.msra.mxu0 %v1504_v9  ;;  %1298 = vmatprep.mubr.msk.f32.mxu0 %vm1417_vm1, %v1418_v4 }
 0xb05   :  { %1306 = vmatprep.subr.mxu0 %v1418_v4 }
 0xbd6   :  { %v738_v40 = vpop.f32.mrb[8].mxu0 }
 0xbd7   :  { %v742_v41 = vadd.f32 %v738_v40, %v249_v39  ;;  %v1290_v42 = vpop.f32.mrb[9].mxu0 }
 0xbd9   :  { %1356 = vtanh.f32 %v742_v41  ;;  %v1207_v44 = vmul.f32 -1.442695, %v742_v41 }
 0xbdb   :  { %1358 = vpow2.f32 %v1207_v44 }
 0xbe3   :  { %v1357_v43 = vpop.eup %1356 }
 0xbe4   :  { %752 = vrot.lane.b32.xlu0 %v1357_v43, %s1419_s21 }
 0xbe5   :  { %v1359_v45 = vpop.eup %1358 }
 0xbe6   :  { %v746_v46 = vadd.f32 1.0, %v1359_v45 }
 0xbe8   :  { %1360 = vrcp.f32 %v746_v46  ;;  %v1187_v46 = vld [vmem:[%s1663_s7] ss:$0 sm:$0xff]  ;;  %s1424_s7 = smov 4  }
 0xbf2   :  { %v1361_v47 = vpop.eup %1360 }
 0xbf3   :  { %v750_v50 = vmul.f32 %v1361_v47, %v660_v34 }
 0xc56   :  { %v753_v48 = vpop.permute.xlu0 %752 }
 0xc57   :  { %v755_v49 = vmul.f32 %v1361_v47, %v753_v48 }
 0xc59   :  { %757 = vrot.lane.b32.xlu1 %v755_v49, %s1420_s4 }
 0xccb   :  { %v758_v51 = vpop.permute.xlu1 %757 }
 0xccc   :  { %v760_v52 = vadd.f32 %v758_v51, %v750_v50 }
 0xcce   :  { %1362 = vtanh.f32 %v760_v52 }
 0xcd8   :  { %v1363_v53 = vpop.eup %1362 }
 0xcd9   :  { %763 = vrot.lane.b32.xlu0 %v1363_v53, %s1421_s22  ;;  %v1147_v53 = vld [vmem:[%s1664_s8] sm:$0xff]  ;;  %s1425_s8 = smov [#allocation2]  }
 0xcda   :  { %s1179_s19 = sshll.u32 %s1425_s8, 4  ;;  %s1180_s19 = int_to_ptr.vmem [resolvable:$true] %s1179_s19 }
 0xcdb   :  { %s1392_s2 = scalar_lea.vmem %s1180_s19, 128  ;;  %p1397_p1 = scmp.lt.s32.totalorder %s1180_s19, %s1180_s19 }
 0xcdc   :  { %p1393_p0 = scmp.ne.s32.totalorder %s1180_s19, %s1392_s2  ;;  %p1398_p2 = scmp.lt.s32.totalorder %s1392_s2, %s1392_s2 }
 0xcde   :  { %p1399_p3 = por %p1398_p2, %p1397_p1 }
 0xce0   :  { %p1400_p4 = pnand %p1399_p3, %p1393_p0 }
 0xd4b   :  { %v764_v54 = vpop.permute.xlu0 %763 }
 0xd4c   :  { %v766_v55 = vmul.f32 %v1361_v47, %v764_v54  ;;  %v114_v47 = vadd.f32 %v1187_v46, %v1523_v13 }
 0xd4e   :  { %768 = vrot.lane.b32.xlu1 %v766_v55, %s1422_s23 }
 0xdc0   :  { %v769_v56 = vpop.permute.xlu1 %768 }
 0xdc1   :  { %1294 = vmatmul.mubr.msk.f32.vlgmr.msra.gmra.mrb[10].mxu1 %vm268_vm4, %v769_v56 }
 0xdc2   :  { %1302 = vmatpush3.msra.mxu1 %v1504_v9  ;;  %1303 = vmatprep.mubr.msk.f32.mxu1 %vm1417_vm1, %v1418_v4 }
 0xe94   :  { %v838_v58 = vpop.f32.mrb[10].mxu1 }
 0xe95   :  { %v842_v59 = vadd.f32 %v838_v58, %v254_v57  ;;  %v1295_v60 = vpop.f32.mrb[11].mxu1 }
 0xe97   :  { %1364 = vtanh.f32 %v842_v59  ;;  %v1209_v62 = vmul.f32 -1.442695, %v842_v59 }
 0xe99   :  { %1366 = vpow2.f32 %v1209_v62 }
 0xea1   :  { %v1365_v61 = vpop.eup %1364 }
 0xea2   :  { %852 = vrot.lane.b32.xlu0 %v1365_v61, %s1419_s21 }
 0xea3   :  { %v1367_v63 = vpop.eup %1366 }
 0xea4   :  { %v846_v0 = vadd.f32 1.0, %v1367_v63 }
 0xea6   :  { %1368 = vrcp.f32 %v846_v0 }
 0xeb0   :  { %v1369_v1 = vpop.eup %1368 }
 0xeb1   :  { %v850_v3 = vmul.f32 %v1369_v1, %v760_v52 }
 0xf14   :  { %v853_v9 = vpop.permute.xlu0 %852 }
 0xf15   :  { %v855_v2 = vmul.f32 %v1369_v1, %v853_v9 }
 0xf17   :  { %857 = vrot.lane.b32.xlu1 %v855_v2, %s1420_s4 }
 0xf89   :  { %v858_v5 = vpop.permute.xlu1 %857 }
 0xf8a   :  { %v860_v6 = vadd.f32 %v858_v5, %v850_v3 }
 0xf8c   :  { %1370 = vtanh.f32 %v860_v6 }
 0xf96   :  { %v1371_v7 = vpop.eup %1370 }
 0xf97   :  { %863 = vrot.lane.b32.xlu0 %v1371_v7, %s1421_s22 }
0x1009   :  { %v864_v8 = vpop.permute.xlu0 %863 }
0x100a   :  { %v866_v10 = vmul.f32 %v1369_v1, %v864_v8 }
0x100c   :  { %868 = vrot.lane.b32.xlu1 %v866_v10, %s1422_s23 }
0x107e   :  { %v869_v12 = vpop.permute.xlu1 %868 }
0x107f   :  { %1299 = vmatmul.mubr.msk.f32.vlgmr.msra.gmra.mrb[10].mxu0 %vm268_vm4, %v869_v12 }
0x1080   :  { %1308 = vmatprep.mubr.msk.f32.mxu0 %vm1417_vm1, %v1418_v4  ;;  %1307 = vmatpush3.msra.mxu0 %v1067_v18 }
0x1152   :  { %v938_v15 = vpop.f32.mrb[10].mxu0 }
0x1153   :  { %v942_v16 = vadd.f32 %v938_v15, %v259_v14  ;;  %v1300_v17 = vpop.f32.mrb[11].mxu0 }
0x1155   :  { %1372 = vtanh.f32 %v942_v16  ;;  %v1211_v21 = vmul.f32 -1.442695, %v942_v16 }
0x1157   :  { %1374 = vpow2.f32 %v1211_v21 }
0x115f   :  { %v1373_v20 = vpop.eup %1372 }
0x1160   :  { %952 = vrot.lane.b32.xlu0 %v1373_v20, %s1419_s21 }
0x1161   :  { %v1375_v22 = vpop.eup %1374 }
0x1162   :  { %v946_v23 = vadd.f32 1.0, %v1375_v22 }
0x1164   :  { %1376 = vrcp.f32 %v946_v23 }
0x116e   :  { %v1377_v24 = vpop.eup %1376 }
0x116f   :  { %v950_v4 = vmul.f32 %v1377_v24, %v860_v6 }
0x11d2   :  { %v953_v25 = vpop.permute.xlu0 %952 }
0x11d3   :  { %v955_v26 = vmul.f32 %v1377_v24, %v953_v25 }
0x11d5   :  { %957 = vrot.lane.b32.xlu1 %v955_v26, %s1420_s4 }
0x1247   :  { %v958_v27 = vpop.permute.xlu1 %957 }
0x1248   :  { %v960_v19 = vadd.f32 %v958_v27, %v950_v4 }
0x124a   :  { %1378 = vtanh.f32 %v960_v19 }
0x1254   :  { %v1379_v28 = vpop.eup %1378 }
0x1255   :  { %963 = vrot.lane.b32.xlu0 %v1379_v28, %s1421_s22 }
0x12c7   :  { %v964_v29 = vpop.permute.xlu0 %963 }
0x12c8   :  { %v966_v30 = vmul.f32 %v1377_v24, %v964_v29 }
0x12ca   :  { %968 = vrot.lane.b32.xlu1 %v966_v30, %s1422_s23 }
0x133c   :  { %v969_v31 = vpop.permute.xlu1 %968 }
0x133d   :  { %1304 = vmatmul.mubr.msk.f32.vlgmr.msra.gmra.mrb[12].mxu1 %vm268_vm4, %v969_v31 }
0x1410   :  { %v1038_v33 = vpop.f32.mrb[12].mxu1 }
0x1411   :  { %v1042_v34 = vadd.f32 %v1038_v33, %v264_v32  ;;  %v1305_v35 = vpop.f32.mrb[13].mxu1 }
0x1413   :  { %1380 = vtanh.f32 %v1042_v34  ;;  %v1213_v37 = vmul.f32 -1.442695, %v1042_v34 }
0x1415   :  { %1382 = vpow2.f32 %v1213_v37 }
0x141d   :  { %v1381_v36 = vpop.eup %1380 }
0x141e   :  { %1052 = vrot.lane.b32.xlu0 %v1381_v36, %s1419_s21 }
0x141f   :  { %v1383_v38 = vpop.eup %1382 }
0x1420   :  { %v1046_v39 = vadd.f32 1.0, %v1383_v38 }
0x1422   :  { %1384 = vrcp.f32 %v1046_v39 }
0x142c   :  { %v1385_v40 = vpop.eup %1384 }
0x142d   :  { %v1050_v43 = vmul.f32 %v1385_v40, %v960_v19 }
0x1490   :  { %v1053_v41 = vpop.permute.xlu0 %1052 }
0x1491   :  { %v1055_v42 = vmul.f32 %v1385_v40, %v1053_v41 }
0x1493   :  { %1057 = vrot.lane.b32.xlu1 %v1055_v42, %s1420_s4 }
0x1505   :  { %v1058_v44 = vpop.permute.xlu1 %1057 }
0x1506   :  { %v1060_v11 = vadd.f32 %v1058_v44, %v1050_v43 }
0x1508   :  { %1386 = vtanh.f32 %v1060_v11 }
0x1512   :  { %v1387_v45 = vpop.eup %1386 }
0x1513   :  { %1063 = vrot.lane.b32.xlu0 %v1387_v45, %s1421_s22 }
0x1517   :  { %1072 = vrot.lane.b32.xlu0 %v114_v47, %s1423_s17 }
0x1585   :  { %v1064_v48 = vpop.permute.xlu0 %1063 }
0x1586   :  { %v1066_v49 = vmul.f32 %v1385_v40, %v1064_v48 }
0x1588   :  { %1069 = vrot.lane.b32.xlu1 %v1066_v49, %s1422_s23 }
0x1589   :  { %v1073_v51 = vpop.permute.xlu0 %1072 }
0x15fa   :  { %v1070_v50 = vpop.permute.xlu1 %1069 }
0x15fb   :  { %1309 = vmatmul.mubr.msk.f32.vlgmr.msra.gmra.mrb[12].mxu0 %vm268_vm4, %v1070_v50 }
0x16ce   :  { %v1143_v52 = vpop.f32.mrb[12].mxu0 }
0x16cf   :  { %v1144_v54 = vadd.f32 %v1143_v52, %v1073_v51  ;;  %v1310_v55 = vpop.f32.mrb[13].mxu0 }
0x16d1   :  { %v1148_v56 = vadd.f32 %v1147_v53, %v1144_v54 }
0x16d3   :  { %v1149_v13 = vsel %vm133_vm2, %v1148_v56, -inf }
0x16d4   :  { %1150 = vmax.xlane.f32.xlu1 %v1149_v13 }
0x1761   :  { %v1151_v57 = vpop.xlane.xlu1 %1150 }
0x1762   :  { %v1152_v58 = vsub.f32 %v1148_v56, %v1151_v57 }
0x1764   :  { %v1153_v59 = vmul.f32 1.442695, %v1152_v58 }
0x1766   :  { %1388 = vpow2.f32 %v1153_v59 }
0x1770   :  { %v1389_v60 = vpop.eup %1388 }
0x1771   :  { %v1155_v61 = vsel %vm133_vm2, %v1389_v60, 0.0 }
0x1772   :  { %1156 = vadd.xlane.f32.xlu0 %v1155_v61 }
0x17ff   :  { %v1157_v62 = vpop.xlane.xlu0 %1156 }
0x1800   :  { %1390 = vrcp.f32 %v1157_v62 }
0x180a   :  { %v1391_v63 = vpop.eup %1390 }
0x180b   :  { %v1159_v0 = vmul.f32 %v1391_v63, %v1389_v60 }
0x180d   :  { %1165 = vrot.lane.b32.xlu1 %v1159_v0, %s1424_s7  ;;  %v1160_v1 = vmul.f32 %v1159_v0, %v114_v47 }
0x180f   :  { %v1161_v9 = vsel %vm133_vm2, %v1160_v1, 0.0 }
0x1810   :  { %1162 = vadd.xlane.f32.xlu0 %v1161_v9 }
0x187f   :  { %v1166_v2 = vpop.permute.xlu1 %1165 }
0x1880   :  { %v1168_v3 = vsel %vm133_vm2, %v114_v47, %v1166_v2 }
0x189d   :  { %v1163_v5 = vpop.xlane.xlu0 %1162 }
0x189e   :  { %v1169_v6 = vsel %vm268_vm4, %v1168_v3, %v1163_v5 }
0x189f   :  { %v1171_v7 = vsel %vm1170_vm5, %v1169_v6, 0.0 }
0x18a0   :  { %1172 = vst [vmem:[#allocation2] sm:$0xff] %v1171_v7 }
0x18a1   :  { %1403 = shalt.err (!%p1400_p4)
}
0x18a2   :  { %s1404_s3 = scalar_lea.hbm %s1665_s9, 128 }
0x18a3   :  { %p1405_p5 = scmp.ne.s32.totalorder %s1665_s9, %s1404_s3  ;;  %p1408_p6 = scmp.lt.u32.totalorder %s1404_s3, %s1665_s9 }
0x18a5   :  { %p1410_p7 = pnand %p1408_p6, %p1405_p5 }
0x18a7   :  { %1413 = shalt.err (!%p1410_p7)
}
0x18a8   :  { %1182 = dma.vmem_to_hbm [thread:$0]  %s1180_s19, 128, %s1665_s9, [#allocation3]  }
0x18a9   :  { %1414 = dma.done.wait [#allocation3], 128  }
0x18aa   :  { %1415 = vsyncadd [#allocation3], 4294967168 }
0x18ab   :  { %1186 = vsyncpa [#allocation3], 1 }

</bundles_post_ra>
